<compile_context>
chip_gen: v7x
topology: tpu7x:2x2x1
jax: 0.10.0
libtpu: 0.0.40
codegen_flags: <defaults>
</compile_context>

<pallas_src>
import jax
import jax.numpy as jnp
from jax.experimental import pallas as pl
from jax.experimental.pallas import tpu as pltpu

F_PAD = 128  # lane width


def _seq_kernel(x_ref, w1_ref, b1_ref, w2_ref, b2_ref, o_ref, xbuf):
    f_in = x_ref.shape[1]
    f_out = o_ref.shape[1]

    # Zero-pad the narrow (tb, f_in) input tile to (tb, 128) lanes in VMEM.
    # Cheap VPU work; avoids ever materializing a padded copy of x in HBM.
    xbuf[...] = jnp.zeros_like(xbuf)
    xbuf[:, :f_in] = x_ref[...]
    x = xbuf[...]                                             # [tb, 128]

    # Linear 1 + ReLU   (weights already [in, out] -> no in-kernel transpose)
    h = jnp.dot(x, w1_ref[...], preferred_element_type=jnp.float32)
    h = jnp.maximum(h + b1_ref[...], 0.0)

    # Linear 2 + Sigmoid.  sigmoid(z) = 0.5*tanh(z/2) + 0.5: single EUP
    # transcendental, exact (no approx reciprocal).
    z = jnp.dot(h, w2_ref[...], preferred_element_type=jnp.float32)
    z = z + b2_ref[...]
    sig = 0.5 * jnp.tanh(0.5 * z) + 0.5

    # Narrow (lane-masked) store of only the real output features.
    o_ref[...] = sig[:, :f_out].astype(o_ref.dtype)


def seq_forward(x, w1, b1, w2, b2, *, tb=4096):
    """y = sigmoid(relu(x @ w1^T + b1) @ w2^T + b2), torch.nn.Linear layout."""
    B, F_in = x.shape
    F_hid = w1.shape[0]
    F_out = w2.shape[0]
    dt = x.dtype

    # ---- Trace-time weight layout prep (tiny: 10x10 -> 128x128) ------------
    # Pre-transpose to [in, out] and zero-pad features to 128 lanes.
    w1_p = jnp.zeros((F_PAD, F_PAD), dt).at[:F_in, :F_hid].set(w1.T)
    b1_p = jnp.zeros((1, F_PAD), dt).at[0, :F_hid].set(b1)
    w2_p = jnp.zeros((F_PAD, F_PAD), dt).at[:F_hid, :F_out].set(w2.T)
    b2_p = jnp.zeros((1, F_PAD), dt).at[0, :F_out].set(b2)

    # ---- Batch tile selection ------------------------------------------------
    # Multiple of 8 sublanes, no larger than the (rounded-up) batch.
    tb = max(8, (int(tb) // 8) * 8)
    tb = min(tb, ((B + 7) // 8) * 8)
    # Keep >= 4 grid steps (2x v7x's 2 TensorCores) when the batch allows it,
    # so the "parallel" batch axis can be megacore-sharded; no-op on v5e/v6e.
    min_steps = min(4, pl.cdiv(B, 8))
    if pl.cdiv(B, tb) < min_steps:
        tb = max(8, ((pl.cdiv(B, min_steps) + 7) // 8) * 8)

    grid = (pl.cdiv(B, tb),)  # ragged last block handled by Pallas masking

    return pl.pallas_call(
        _seq_kernel,
        out_shape=jax.ShapeDtypeStruct((B, F_out), dt),
        grid=grid,
        in_specs=[
            pl.BlockSpec((tb, F_in), lambda i: (i, 0)),      # x: batch-tiled, unpadded
            pl.BlockSpec((F_PAD, F_PAD), lambda i: (0, 0)),  # w1: resident
            pl.BlockSpec((1, F_PAD), lambda i: (0, 0)),      # b1: resident
            pl.BlockSpec((F_PAD, F_PAD), lambda i: (0, 0)),  # w2: resident
            pl.BlockSpec((1, F_PAD), lambda i: (0, 0)),      # b2: resident
        ],
        out_specs=pl.BlockSpec((tb, F_out), lambda i: (i, 0)),  # narrow output
        scratch_shapes=[pltpu.VMEM((tb, F_PAD), jnp.float32)],  # in-kernel lane pad
        compiler_params=pltpu.CompilerParams(
            dimension_semantics=("parallel",),
        ),
    )(x, w1_p, b1_p, w2_p, b2_p)


def _ref_forward(x, w1, b1, w2, b2):
    hp = jax.lax.Precision.HIGHEST
    h = jnp.maximum(jnp.dot(x, w1.T, precision=hp) + b1, 0.0)
    return jax.nn.sigmoid(jnp.dot(h, w2.T, precision=hp) + b2)


if __name__ == "__main__":
    key = jax.random.PRNGKey(0)
    k_x, k_w1, k_b1, k_w2, k_b2 = jax.random.split(key, 5)

    B, F = 32, 10  # batch=32, features=10 (matches Linear(10, 10))
    x = jax.random.normal(k_x, (B, F), dtype=jnp.float32)

    # Deterministic PyTorch-like init: U(-1/sqrt(fan_in), 1/sqrt(fan_in))
    bound = 1.0 / jnp.sqrt(jnp.float32(F))
    w1 = jax.random.uniform(k_w1, (F, F), jnp.float32, -bound, bound)
    b1 = jax.random.uniform(k_b1, (F,), jnp.float32, -bound, bound)
    w2 = jax.random.uniform(k_w2, (F, F), jnp.float32, -bound, bound)
    b2 = jax.random.uniform(k_b2, (F,), jnp.float32, -bound, bound)

    # Default tb: at B=32 the >=4-grid-step rule kicks in -> tb=8, 4-step grid.
    fwd = jax.jit(seq_forward, static_argnames=("tb",))
    out = fwd(x, w1, b1, w2, b2)
    jax.block_until_ready(out)

    ref = _ref_forward(x, w1, b1, w2, b2)
    assert out.shape == (B, F)
    # Sigmoid is now exact (tanh form); the tolerance only covers MXU f32
    # matmul pass-precision differences vs. the XLA reference matmul.
    assert jnp.allclose(out, ref, atol=1e-3, rtol=1e-3), float(
        jnp.max(jnp.abs(out - ref)))

    print("KERNEL_OK")
</pallas_src>

<mosaic_0001>
module attributes {stable_mosaic.version = 11 : i64} {
  func.func @_seq_kernel(%arg0: i32, %arg1: memref<8x10xf32, #tpu.memory_space<vmem>>, %arg2: memref<128x128xf32, #tpu.memory_space<vmem>>, %arg3: memref<1x128xf32, #tpu.memory_space<vmem>>, %arg4: memref<128x128xf32, #tpu.memory_space<vmem>>, %arg5: memref<1x128xf32, #tpu.memory_space<vmem>>, %arg6: memref<8x10xf32, #tpu.memory_space<vmem>>, %arg7: memref<8x128xf32, #tpu.memory_space<vmem>>) attributes {dimension_semantics = [#tpu.dimension_semantics<parallel>], iteration_bounds = array<i64: 4>, scalar_prefetch = 0 : i64, scratch_operands = 1 : i64, tpu.core_type = #tpu.core_type<tc>, window_params = [{transform_indices = @transform_0, window_bounds = array<i64: 8, 10>}, {pipeline_mode = #tpu.pipeline_mode<synchronous>, transform_indices = @transform_1, window_bounds = array<i64: 128, 128>}, {pipeline_mode = #tpu.pipeline_mode<synchronous>, transform_indices = @transform_2, window_bounds = array<i64: 1, 128>}, {pipeline_mode = #tpu.pipeline_mode<synchronous>, transform_indices = @transform_3, window_bounds = array<i64: 128, 128>}, {pipeline_mode = #tpu.pipeline_mode<synchronous>, transform_indices = @transform_4, window_bounds = array<i64: 1, 128>}, {transform_indices = @transform_5, window_bounds = array<i64: 8, 10>}]} {
    %cst = arith.constant 0.000000e+00 : f32
    %0 = vector.broadcast %cst : f32 to vector<8x128xf32>
    %c0 = arith.constant 0 : index
    %c0_0 = arith.constant 0 : index
    %1 = vector.load %arg7[%c0, %c0_0] : memref<8x128xf32, #tpu.memory_space<vmem>>, vector<8x128xf32>
    tpu.vector_store %arg7[%c0, %c0_0], %0 {strides = array<i32>} : memref<8x128xf32, #tpu.memory_space<vmem>>, vector<8x128xf32>,
    %c0_1 = arith.constant 0 : index
    %c0_2 = arith.constant 0 : index
    %2 = vector.load %arg1[%c0_1, %c0_2] : memref<8x10xf32, #tpu.memory_space<vmem>>, vector<8x10xf32>
    %c0_3 = arith.constant 0 : index
    %c0_4 = arith.constant 0 : index
    %3 = vector.load %arg7[%c0_3, %c0_4] : memref<8x128xf32, #tpu.memory_space<vmem>>, vector<8x10xf32>
    tpu.vector_store %arg7[%c0_3, %c0_4], %2 {strides = array<i32>} : memref<8x128xf32, #tpu.memory_space<vmem>>, vector<8x10xf32>,
    %c0_5 = arith.constant 0 : index
    %c0_6 = arith.constant 0 : index
    %4 = vector.load %arg7[%c0_5, %c0_6] : memref<8x128xf32, #tpu.memory_space<vmem>>, vector<8x128xf32>
    %c0_7 = arith.constant 0 : index
    %c0_8 = arith.constant 0 : index
    %5 = vector.load %arg2[%c0_7, %c0_8] : memref<128x128xf32, #tpu.memory_space<vmem>>, vector<128x128xf32>
    %cst_9 = arith.constant dense<0.000000e+00> : vector<8x128xf32>
    %6 = tpu.matmul %4, %5, %cst_9 {dimension_numbers = #tpu.dot_dimension_numbers<[1], [0], [0], [1], [0, 0, 1, 1], [], []>} : vector<8x128xf32>, vector<128x128xf32>, vector<8x128xf32> -> vector<8x128xf32>
    %c0_10 = arith.constant 0 : index
    %c0_11 = arith.constant 0 : index
    %7 = vector.load %arg3[%c0_10, %c0_11] : memref<1x128xf32, #tpu.memory_space<vmem>>, vector<1x128xf32>
    %8 = vector.broadcast %7 : vector<1x128xf32> to vector<8x128xf32>
    %9 = arith.addf %6, %8 : vector<8x128xf32>
    %cst_12 = arith.constant 0.000000e+00 : f32
    %10 = vector.broadcast %cst_12 : f32 to vector<8x128xf32>
    %11 = arith.maximumf %9, %10 : vector<8x128xf32>
    %c0_13 = arith.constant 0 : index
    %c0_14 = arith.constant 0 : index
    %12 = vector.load %arg4[%c0_13, %c0_14] : memref<128x128xf32, #tpu.memory_space<vmem>>, vector<128x128xf32>
    %cst_15 = arith.constant dense<0.000000e+00> : vector<8x128xf32>
    %13 = tpu.matmul %11, %12, %cst_15 {dimension_numbers = #tpu.dot_dimension_numbers<[1], [0], [0], [1], [0, 0, 1, 1], [], []>} : vector<8x128xf32>, vector<128x128xf32>, vector<8x128xf32> -> vector<8x128xf32>
    %c0_16 = arith.constant 0 : index
    %c0_17 = arith.constant 0 : index
    %14 = vector.load %arg5[%c0_16, %c0_17] : memref<1x128xf32, #tpu.memory_space<vmem>>, vector<1x128xf32>
    %15 = vector.broadcast %14 : vector<1x128xf32> to vector<8x128xf32>
    %16 = arith.addf %13, %15 : vector<8x128xf32>
    %cst_18 = arith.constant 5.000000e-01 : f32
    %17 = vector.broadcast %cst_18 : f32 to vector<8x128xf32>
    %18 = arith.mulf %17, %16 : vector<8x128xf32>
    %19 = math.tanh %18 : vector<8x128xf32>
    %cst_19 = arith.constant 5.000000e-01 : f32
    %20 = vector.broadcast %cst_19 : f32 to vector<8x128xf32>
    %21 = arith.mulf %20, %19 : vector<8x128xf32>
    %cst_20 = arith.constant 5.000000e-01 : f32
    %22 = vector.broadcast %cst_20 : f32 to vector<8x128xf32>
    %23 = arith.addf %21, %22 : vector<8x128xf32>
    %24 = vector.extract_strided_slice %23 {offsets = [0, 0], sizes = [8, 10], strides = [1, 1]} : vector<8x128xf32> to vector<8x10xf32>
    %c0_21 = arith.constant 0 : index
    %c0_22 = arith.constant 0 : index
    %25 = vector.load %arg6[%c0_21, %c0_22] : memref<8x10xf32, #tpu.memory_space<vmem>>, vector<8x10xf32>
    tpu.vector_store %arg6[%c0_21, %c0_22], %24 {strides = array<i32>} : memref<8x10xf32, #tpu.memory_space<vmem>>, vector<8x10xf32>,
    return
  }
  func.func @transform_0(%arg0: i32) -> (i32, i32) {
    %c0_i32 = arith.constant 0 : i32
    %c0_i32_0 = arith.constant 0 : i32
    return %arg0, %c0_i32 : i32, i32
  }
  func.func @transform_1(%arg0: i32) -> (i32, i32) {
    %c0_i32 = arith.constant 0 : i32
    %c0_i32_0 = arith.constant 0 : i32
    %c0_i32_1 = arith.constant 0 : i32
    return %c0_i32, %c0_i32_0 : i32, i32
  }
  func.func @transform_2(%arg0: i32) -> (i32, i32) {
    %c0_i32 = arith.constant 0 : i32
    %c0_i32_0 = arith.constant 0 : i32
    %c0_i32_1 = arith.constant 0 : i32
    return %c0_i32, %c0_i32_0 : i32, i32
  }
  func.func @transform_3(%arg0: i32) -> (i32, i32) {
    %c0_i32 = arith.constant 0 : i32
    %c0_i32_0 = arith.constant 0 : i32
    %c0_i32_1 = arith.constant 0 : i32
    return %c0_i32, %c0_i32_0 : i32, i32
  }
  func.func @transform_4(%arg0: i32) -> (i32, i32) {
    %c0_i32 = arith.constant 0 : i32
    %c0_i32_0 = arith.constant 0 : i32
    %c0_i32_1 = arith.constant 0 : i32
    return %c0_i32, %c0_i32_0 : i32, i32
  }
  func.func @transform_5(%arg0: i32) -> (i32, i32) {
    %c0_i32 = arith.constant 0 : i32
    %c0_i32_0 = arith.constant 0 : i32
    return %arg0, %c0_i32 : i32, i32
  }
}

</mosaic_0001>

<bundles_post_ra>
// kernel: seq_forward.1
= control target key start
LH: loop header
LB: loop body
LE: loop exit
PB: predicated region body
PF: predicated region fallthrough
CT: control target
= control target key end

     0   :  { %s687_s18 = smov 0   ;;  %s831_s0 = inlined_call_operand.vmem [shape: f32[32,10], index: 0, kind: input, shape index: {}]   ;;  %s832_s1 = inlined_call_operand.vmem [shape: f32[128,128], index: 1, kind: input, shape index: {}]   ;;  %s833_s2 = inlined_call_operand.vmem [shape: f32[1,128], index: 2, kind: input, shape index: {}]   ;;  %s834_s3 = inlined_call_operand.vmem [shape: f32[128,128], index: 3, kind: input, shape index: {}]   ;;  %s835_s4 = inlined_call_operand.vmem [shape: f32[1,128], index: 4, kind: input, shape index: {}]   ;;  %s836_s5 = inlined_call_operand.vmem [shape: f32[32,10], index: 5, kind: output, shape index: {}]  }
   0x1 LB: > { %s470_s19 = sadd.s32 4294967295, %s652_s18   ;;  %p474_p0 = scmp.ge.s32.totalorder %s652_s18, 1  ;;  %s652_s18 = sphi %s687_s18, %s15_s18  }
   0x2   : > { %p186_p1 = scmp.lt.s32.totalorder %s652_s18, 5 }
   0x4   : > { %p187_p2 = pnand %p474_p0, %p186_p1 }
   0x5   : > { %v225_v0 = vld [vmem:[%s832_s1] sm:$0xff] (!%p187_p2)  ;;  %v226_v1 = vld [vmem:[%s832_s1 + $0x8] sm:$0xff] (!%p187_p2)  ;;  %v227_v2 = vld [vmem:[%s832_s1 + $0x10] sm:$0xff] (!%p187_p2)  ;;  %p212_p3 = scmp.lt.s32.totalorder (!%p187_p2), %s470_s19, 3  ;;  %v654_v3 = vmov (!%p187_p2), 0.0|0.0   ;;  %v655_v6 = vmov (!%p187_p2), 0.0  }
   0x6   : > { %190 = sbr.rel (%p187_p2) target bundleno = 487 (0x1e7), region = 40  ;;  %585 = vmatprep.subr.bf16.mxu0 (!%p187_p2), %v654_v3  ;;  %v586_v4 = vpack.c.bf16 (!%p187_p2), %v226_v1, %v225_v0  ;;  %v228_v5 = vld [vmem:[%s832_s1 + $0x18] sm:$0xff] (!%p187_p2)  ;;  %220 = vst [vmem:[#allocation2] sm:$0xff] (!%p187_p2), %v655_v6  ;;  %609 = vmatprep.subr.bf16.mxu1 (!%p187_p2), %v654_v3  ;;  %vm656_vm0 = vmmov (!%p187_p2), 0   ;;  %v229_v8 = vld [vmem:[%s832_s1 + $0x20] sm:$0xff] (!%p187_p2)  ;;  %v230_v9 = vld [vmem:[%s832_s1 + $0x28] sm:$0xff] (!%p187_p2) }
   0x7   : > { %547 = vmatprep.mubr.msk.f32.mxu0 (!%p187_p2), %vm656_vm0, %v655_v6  ;;  %582 = vmatprep.mubr.msk.f32.mxu1 (!%p187_p2), %vm656_vm0, %v655_v6  ;;  %v589_v7 = vpack.c.bf16 (!%p187_p2), %v228_v5, %v227_v2  ;;  %vm222_vm1 = vcmask (!%p187_p2), 80896   ;;  %v319_v10 = vld [vmem:[%s834_s3] sm:$0xff] (!%p187_p2)  ;;  %v320_v11 = vld [vmem:[%s834_s3 + $0x8] sm:$0xff] (!%p187_p2)  ;;  %v321_v14 = vld [vmem:[%s834_s3 + $0x10] sm:$0xff] (!%p187_p2)  ;;  %v592_v16 = vpack.c.bf16 (!%p187_p2), %v230_v9, %v229_v8 }
   0x8   : > { %587 = vmatpush3.bf16.msra.mxu0 (!%p187_p2), %v586_v4  ;;  %v610_v13 = vpack.c.bf16 (!%p187_p2), %v320_v11, %v319_v10  ;;  %v322_v15 = vld [vmem:[%s834_s3 + $0x18] sm:$0xff] (!%p187_p2)  ;;  %v231_v17 = vld [vmem:[%s832_s1 + $0x30] sm:$0xff] (!%p187_p2)  ;;  %v323_v20 = vld [vmem:[%s834_s3 + $0x20] sm:$0xff] (!%p187_p2) }
   0x9   : > { %588 = vmatprep.subr.bf16.mxu0 (!%p187_p2), %v654_v3  ;;  %v232_v18 = vld [vmem:[%s832_s1 + $0x38] sm:$0xff] (!%p187_p2)  ;;  %v613_v19 = vpack.c.bf16 (!%p187_p2), %v322_v15, %v321_v14  ;;  %v324_v21 = vld [vmem:[%s834_s3 + $0x28] sm:$0xff] (!%p187_p2)  ;;  %v233_v23 = vld [vmem:[%s832_s1 + $0x40] sm:$0xff] (!%p187_p2) }
   0xa   : > { %611 = vmatpush3.bf16.msra.mxu1 (!%p187_p2), %v610_v13  ;;  %v595_v22 = vpack.c.bf16 (!%p187_p2), %v232_v18, %v231_v17  ;;  %v234_v24 = vld [vmem:[%s832_s1 + $0x48] sm:$0xff] (!%p187_p2)  ;;  %v616_v25 = vpack.c.bf16 (!%p187_p2), %v324_v21, %v323_v20  ;;  %v325_v26 = vld [vmem:[%s834_s3 + $0x30] sm:$0xff] (!%p187_p2)  ;;  %v326_v27 = vld [vmem:[%s834_s3 + $0x38] sm:$0xff] (!%p187_p2) }
   0xb   : > { %612 = vmatprep.subr.bf16.mxu1 (!%p187_p2), %v654_v3  ;;  %v598_v28 = vpack.c.bf16 (!%p187_p2), %v234_v24, %v233_v23  ;;  %v235_v29 = vld [vmem:[%s832_s1 + $0x50] sm:$0xff] (!%p187_p2)  ;;  %v236_v30 = vld [vmem:[%s832_s1 + $0x58] sm:$0xff] (!%p187_p2)  ;;  %v619_v31 = vpack.c.bf16 (!%p187_p2), %v326_v27, %v325_v26  ;;  %v327_v32 = vld [vmem:[%s834_s3 + $0x40] sm:$0xff] (!%p187_p2) }
   0xc   : > { %590 = vmatpush3.bf16.msra.mxu0 (!%p187_p2), %v589_v7  ;;  %v328_v33 = vld [vmem:[%s834_s3 + $0x48] sm:$0xff] (!%p187_p2)  ;;  %v601_v34 = vpack.c.bf16 (!%p187_p2), %v236_v30, %v235_v29  ;;  %v237_v35 = vld [vmem:[%s832_s1 + $0x60] sm:$0xff] (!%p187_p2)  ;;  %v329_v38 = vld [vmem:[%s834_s3 + $0x50] sm:$0xff] (!%p187_p2) }
   0xd   : > { %s838_s19 = smov (!%p212_p3, %s470_s19), 3  ;;  %591 = vmatprep.subr.bf16.mxu0 %v654_v3  ;;  %v238_v36 = vld [vmem:[%s832_s1 + $0x68] sm:$0xff]  ;;  %v622_v37 = vpack.c.bf16 %v328_v33, %v327_v32  ;;  %v330_v39 = vld [vmem:[%s834_s3 + $0x58] sm:$0xff]  ;;  %v239_v41 = vld [vmem:[%s832_s1 + $0x70] sm:$0xff] }
   0xe   : > { %s475_s7 = sshll.u32 %s838_s19, 3  ;;  %614 = vmatpush3.bf16.msra.mxu1 %v613_v19  ;;  %v604_v40 = vpack.c.bf16 %v238_v36, %v237_v35  ;;  %v240_v42 = vld [vmem:[%s832_s1 + $0x78] sm:$0xff]  ;;  %v625_v43 = vpack.c.bf16 %v330_v39, %v329_v38  ;;  %v331_v44 = vld [vmem:[%s834_s3 + $0x60] sm:$0xff]  ;;  %v332_v45 = vld [vmem:[%s834_s3 + $0x68] sm:$0xff] }
   0xf   : > { %s215_s10 = scalar_lea.vmem %s831_s0, %s475_s7  ;;  %615 = vmatprep.subr.bf16.mxu1 %v654_v3  ;;  %v607_v46 = vpack.c.bf16 %v240_v42, %v239_v41  ;;  %v628_v47 = vpack.c.bf16 %v332_v45, %v331_v44  ;;  %v333_v49 = vld [vmem:[%s834_s3 + $0x70] sm:$0xff]  ;;  %v334_v50 = vld [vmem:[%s834_s3 + $0x78] sm:$0xff]  ;;  %v477_v52 = vld [vmem:[%s833_s2] ss:$0 sm:$0xff]  ;;  %s219_s27 = scalar_lea.vmem %s836_s5, %s475_s7 }
  0x10   : > { %v221_v12 = vld [vmem:[%s215_s10] sm:$0xff]  ;;  %593 = vmatpush3.bf16.msra.mxu0 %v592_v16  ;;  %v631_v51 = vpack.c.bf16 %v334_v50, %v333_v49 }
  0x11   : > { %223 = vst.msk [vmem:[#allocation2] sm:$0xff] %vm222_vm1, %v221_v12  ;;  %594 = vmatprep.subr.bf16.mxu0 %v654_v3  ;;  %v478_v57 = vld [vmem:[%s835_s4] ss:$0 sm:$0xff] }
  0x12   : > { %617 = vmatpush3.bf16.msra.mxu1 %v616_v25 }
  0x13   : > { %618 = vmatprep.subr.bf16.mxu1 %v654_v3 }
  0x14   : > { %596 = vmatpush3.bf16.msra.mxu0 %v595_v22 }
  0x15   : > { %597 = vmatprep.subr.bf16.mxu0 %v654_v3 }
  0x16   : > { %620 = vmatpush3.bf16.msra.mxu1 %v619_v31 }
  0x17   : > { %621 = vmatprep.subr.bf16.mxu1 %v654_v3 }
  0x18   : > { %599 = vmatpush3.bf16.msra.mxu0 %v598_v28  ;;  %v224_v48 = vld [vmem:[#allocation2] sm:$0xff] }
  0x19   : > { %600 = vmatprep.subr.bf16.mxu0 %v654_v3 }
  0x1a   : > { %623 = vmatpush3.bf16.msra.mxu1 %v622_v37 }
  0x1b   : > { %624 = vmatprep.subr.bf16.mxu1 %v654_v3 }
  0x1c   : > { %602 = vmatpush3.bf16.msra.mxu0 %v601_v34 }
  0x1d   : > { %603 = vmatprep.subr.bf16.mxu0 %v654_v3 }
  0x1e   : > { %626 = vmatpush3.bf16.msra.mxu1 %v625_v43 }
  0x1f   : > { %627 = vmatprep.subr.bf16.mxu1 %v654_v3 }
  0x20   : > { %605 = vmatpush3.bf16.msra.mxu0 %v604_v40 }
  0x21   : > { %606 = vmatprep.subr.bf16.mxu0 %v654_v3 }
  0x22   : > { %629 = vmatpush3.bf16.msra.mxu1 %v628_v47 }
  0x23   : > { %630 = vmatprep.subr.bf16.mxu1 %v654_v3 }
  0x24   : > { %608 = vmatpush3.bf16.msra.mxu0 %v607_v46 }
  0x26   : > { %632 = vmatpush3.bf16.msra.mxu1 %v631_v51 }
  0x27   : > { %548 = vmatmul.mubr.f32.vlgmr.msra.gmra.mrb[0].mxu0 %v224_v48 }
  0xfa   : > { %v314_v53 = vpop.f32.mrb[0].mxu0 }
  0xfb   : > { %v315_v54 = vadd.f32 %v477_v52, %v314_v53  ;;  %v549_v55 = vpop.f32.mrb[1].mxu0 }
  0xfd   : > { %v318_v56 = vmax.f32 %v315_v54, 0.0 }
  0xff   : > { %583 = vmatmul.mubr.f32.vlgmr.msra.gmra.mrb[0].mxu1 %v318_v56 }
 0x1d2   : > { %v408_v58 = vpop.f32.mrb[0].mxu1 }
 0x1d3   : > { %v409_v59 = vadd.f32 %v478_v57, %v408_v58  ;;  %v584_v60 = vpop.f32.mrb[1].mxu1 }
 0x1d5   : > { %v412_v61 = vmul.f32 0.5, %v409_v59 }
 0x1d7   : > { %644 = vtanh.f32 %v412_v61 }
 0x1e1   : > { %v645_v62 = vpop.eup %644 }
 0x1e2   : > { %v414_v63 = vmul.f32 0.5, %v645_v62 }
 0x1e4   : > { %v415_v0 = vadd.f32 0.5, %v414_v63 }
 0x1e6   : > { %416 = vst.msk [vmem:[%s219_s27] sm:$0xff] %vm222_vm1, %v415_v0 }
 0x1e7 PF: > { %s15_s18 = sadd.s32 1, %s652_s18  }
 0x1e8   : > { %p12_p4 = scmp.ge.s32.totalorder %s15_s18, 6  }
 0x1ea   :  { %14 = sbr.rel (!%p12_p4) target bundleno = 1 (0x1), region = 70 }

</bundles_post_ra>
